<compile_context>
chip_gen: v7x
topology: tpu7x:2x2x1
jax: 0.10.0
libtpu: 0.0.40
codegen_flags: <defaults>
</compile_context>

<pallas_src>
import functools

import jax
import jax.numpy as jnp
from jax.experimental import pallas as pl
from jax.experimental.pallas import tpu as pltpu


def _rnn_kernel(x_ref, wih_ref, whh_ref, b_rnn_ref, wfc_ref, bfc_ref, o_ref, *, bb):
    """One grid step = `bb` independent sequences in a time-major 2-D layout.

    x_ref: (T*bb, I)  rows ordered [t0:(b0..b_{bb-1}), t1:(b0..), ...]
    o_ref: (T*bb, O)  same row ordering
    """
    TB = x_ref.shape[0]
    T = TB // bb

    wih = wih_ref[...]            # (I, H)
    whh = whh_ref[...]            # (H, H) -- hoisted, reused every step
    wfc = wfc_ref[...]            # (H, O)

    # Hoisted input projection: one matmul for all timesteps, both RNN biases folded in.
    xproj = (jnp.dot(x_ref[...], wih, preferred_element_type=jnp.float32)
             + b_rnn_ref[...])                                    # (T*bb, H), time-major

    # Serial recurrence: only h @ W_hh^T + tanh is on the dependency chain.  Hidden states
    # stay in vregs; no per-step VMEM stores.
    # TODO(synk): for large T switch to lax.fori_loop(..., unroll=k) over a (T*bb, H) scratch
    #             to bound vreg live ranges; at T=8 full unroll is the right choice.
    # TODO(synk): on v7x, pltpu.matmul_push_rhs/matmul_acc_lhs could hold W_hh resident in the
    #             MXU across the unrolled steps (modest win at H=32).
    hs = []
    h = jnp.tanh(xproj[0:bb, :])                                  # t = 0: h0 == 0, no W_hh term
    hs.append(h)
    for t in range(1, T):
        h = jnp.tanh(xproj[t * bb:(t + 1) * bb, :]
                     + jnp.dot(h, whh, preferred_element_type=jnp.float32))
        hs.append(h)

    # Batched output FC: one concat + one matmul + one 2-D store.
    hs_all = jnp.concatenate(hs, axis=0)                          # (T*bb, H), time-major
    o_ref[...] = (jnp.dot(hs_all, wfc, preferred_element_type=jnp.float32)
                  + bfc_ref[...]).astype(o_ref.dtype)


def _detect_parallel_cores() -> int:
    """2 on v7x (2 TensorCores/chip, shard the independent batch), else 1."""
    try:
        kind = jax.devices()[0].device_kind.lower()
    except Exception:
        return 1
    return 2 if ("v7" in kind or "7x" in kind) else 1


@functools.partial(jax.jit, static_argnames=("n_par",))
def _forward_impl(x, w_ih, w_hh, b_ih, b_hh, w_fc, b_fc, *, n_par):
    B, T, I = x.shape
    H = w_hh.shape[0]
    O = w_fc.shape[0]
    bb = B // n_par                                               # sequences per grid step

    # Kernel-friendly layouts built in the wrapper (tiny XLA ops, off the kernel path):
    # x: (B, T, I) -> per-core time-major 2-D slab (n_par * T * bb, I).
    x2 = (x.astype(jnp.float32)
            .reshape(n_par, bb, T, I)
            .transpose(0, 2, 1, 3)
            .reshape(n_par * T * bb, I))
    wih_t = jnp.transpose(w_ih).astype(jnp.float32)               # (I, H)
    whh_t = jnp.transpose(w_hh).astype(jnp.float32)               # (H, H)
    wfc_t = jnp.transpose(w_fc).astype(jnp.float32)               # (H, O)
    b_rnn = (b_ih + b_hh).reshape(1, H).astype(jnp.float32)       # folded RNN biases
    bfc2 = b_fc.reshape(1, O).astype(jnp.float32)

    kernel = functools.partial(_rnn_kernel, bb=bb)

    out2 = pl.pallas_call(
        kernel,
        out_shape=jax.ShapeDtypeStruct((n_par * T * bb, O), jnp.float32),
        grid=(n_par,),
        in_specs=[
            pl.BlockSpec((T * bb, I), lambda g: (g, 0)),          # per-core x slab (2-D)
            pl.BlockSpec((I, H), lambda g: (0, 0)),               # W_ih^T (resident, fetched once)
            pl.BlockSpec((H, H), lambda g: (0, 0)),               # W_hh^T
            pl.BlockSpec((1, H), lambda g: (0, 0)),               # b_ih + b_hh
            pl.BlockSpec((H, O), lambda g: (0, 0)),               # W_fc^T
            pl.BlockSpec((1, O), lambda g: (0, 0)),               # b_fc
        ],
        out_specs=pl.BlockSpec((T * bb, O), lambda g: (g, 0)),    # 2-D output slab
        compiler_params=pltpu.CompilerParams(
            dimension_semantics=("parallel",),                    # batch shards across TCs on v7x
        ),
        cost_estimate=pl.CostEstimate(
            flops=2 * B * T * (I * H + H * H + H * O),
            transcendentals=B * T * H,
            bytes_accessed=4 * (B * T * I + I * H + H * H + 2 * H + H * O + 2 * O + B * T * O),
        ),
    )(x2, wih_t, whh_t, b_rnn, wfc_t, bfc2)

    # Undo the kernel layout: (n_par*T*bb, O) -> (B, T, O).  Pure wrapper-side plumbing.
    return (out2.reshape(n_par, T, bb, O)
                .transpose(0, 2, 1, 3)
                .reshape(B, T, O))


def simple_rnn_forward(x, w_ih, w_hh, b_ih, b_hh, w_fc, b_fc):
    """x: (B, T, I) float32.  Weights in PyTorch convention:
       w_ih (H, I), w_hh (H, H), b_ih (H,), b_hh (H,), w_fc (O, H), b_fc (O,)."""
    n_par = _detect_parallel_cores()
    if x.shape[0] % n_par != 0:
        n_par = 1
    return _forward_impl(x, w_ih, w_hh, b_ih, b_hh, w_fc, b_fc, n_par=n_par)


def _reference_forward(x, w_ih, w_hh, b_ih, b_hh, w_fc, b_fc):
    """Pure-JAX reference matching torch semantics, for verification."""
    B, T, I = x.shape
    H = w_hh.shape[0]
    h = jnp.zeros((B, H), jnp.float32)
    outs = []
    for t in range(T):
        h = jnp.tanh(x[:, t, :] @ w_ih.T + b_ih + h @ w_hh.T + b_hh)
        outs.append(h @ w_fc.T + b_fc)
    return jnp.stack(outs, axis=1)


if __name__ == "__main__":
    # Small shapes consistent with the module: batch=2, seq=8, input=16, hidden=32, output=16
    B, T, I, H, O = 2, 8, 16, 32, 16

    key = jax.random.PRNGKey(0)
    kx, k1, k2, k3, k4, k5, k6 = jax.random.split(key, 7)

    x = jax.random.normal(kx, (B, T, I), jnp.float32)

    # Deterministic synthetic parameters (PyTorch shape conventions).
    scale = 0.1
    w_ih = scale * jax.random.normal(k1, (H, I), jnp.float32)
    w_hh = scale * jax.random.normal(k2, (H, H), jnp.float32)
    b_ih = scale * jax.random.normal(k3, (H,), jnp.float32)
    b_hh = scale * jax.random.normal(k4, (H,), jnp.float32)
    w_fc = scale * jax.random.normal(k5, (O, H), jnp.float32)
    b_fc = scale * jax.random.normal(k6, (O,), jnp.float32)

    out = simple_rnn_forward(x, w_ih, w_hh, b_ih, b_hh, w_fc, b_fc)
    out = jax.block_until_ready(out)

    ref = _reference_forward(x, w_ih, w_hh, b_ih, b_hh, w_fc, b_fc)
    assert out.shape == (B, T, O)
    assert jnp.allclose(out, ref, atol=1e-5, rtol=1e-5), "mismatch vs reference"

    print("KERNEL_OK")
</pallas_src>

<mosaic_0001>
module attributes {stable_mosaic.version = 11 : i64} {
  func.func @_rnn_kernel(%arg0: i32, %arg1: memref<16x16xf32, #tpu.memory_space<vmem>>, %arg2: memref<16x32xf32, #tpu.memory_space<vmem>>, %arg3: memref<32x32xf32, #tpu.memory_space<vmem>>, %arg4: memref<1x32xf32, #tpu.memory_space<vmem>>, %arg5: memref<32x16xf32, #tpu.memory_space<vmem>>, %arg6: memref<1x16xf32, #tpu.memory_space<vmem>>, %arg7: memref<16x16xf32, #tpu.memory_space<vmem>>) attributes {dimension_semantics = [#tpu.dimension_semantics<parallel>], iteration_bounds = array<i64: 1>, scalar_prefetch = 0 : i64, scratch_operands = 0 : i64, tpu.core_type = #tpu.core_type<tc>, window_params = [{transform_indices = @transform_0, window_bounds = array<i64: 16, 16>}, {pipeline_mode = #tpu.pipeline_mode<synchronous>, transform_indices = @transform_1, window_bounds = array<i64: 16, 32>}, {pipeline_mode = #tpu.pipeline_mode<synchronous>, transform_indices = @transform_2, window_bounds = array<i64: 32, 32>}, {pipeline_mode = #tpu.pipeline_mode<synchronous>, transform_indices = @transform_3, window_bounds = array<i64: 1, 32>}, {pipeline_mode = #tpu.pipeline_mode<synchronous>, transform_indices = @transform_4, window_bounds = array<i64: 32, 16>}, {pipeline_mode = #tpu.pipeline_mode<synchronous>, transform_indices = @transform_5, window_bounds = array<i64: 1, 16>}, {transform_indices = @transform_6, window_bounds = array<i64: 16, 16>}]} {
    %c0 = arith.constant 0 : index
    %c0_0 = arith.constant 0 : index
    %0 = vector.load %arg2[%c0, %c0_0] : memref<16x32xf32, #tpu.memory_space<vmem>>, vector<16x32xf32>
    %c0_1 = arith.constant 0 : index
    %c0_2 = arith.constant 0 : index
    %1 = vector.load %arg3[%c0_1, %c0_2] : memref<32x32xf32, #tpu.memory_space<vmem>>, vector<32x32xf32>
    %c0_3 = arith.constant 0 : index
    %c0_4 = arith.constant 0 : index
    %2 = vector.load %arg5[%c0_3, %c0_4] : memref<32x16xf32, #tpu.memory_space<vmem>>, vector<32x16xf32>
    %c0_5 = arith.constant 0 : index
    %c0_6 = arith.constant 0 : index
    %3 = vector.load %arg1[%c0_5, %c0_6] : memref<16x16xf32, #tpu.memory_space<vmem>>, vector<16x16xf32>
    %cst = arith.constant dense<0.000000e+00> : vector<16x32xf32>
    %4 = tpu.matmul %3, %0, %cst {dimension_numbers = #tpu.dot_dimension_numbers<[1], [0], [0], [1], [0, 0, 1, 1], [], []>} : vector<16x16xf32>, vector<16x32xf32>, vector<16x32xf32> -> vector<16x32xf32>
    %c0_7 = arith.constant 0 : index
    %c0_8 = arith.constant 0 : index
    %5 = vector.load %arg4[%c0_7, %c0_8] : memref<1x32xf32, #tpu.memory_space<vmem>>, vector<1x32xf32>
    %6 = vector.broadcast %5 : vector<1x32xf32> to vector<16x32xf32>
    %7 = arith.addf %4, %6 : vector<16x32xf32>
    %8 = vector.extract_strided_slice %7 {offsets = [0, 0], sizes = [2, 32], strides = [1, 1]} : vector<16x32xf32> to vector<2x32xf32>
    %9 = math.tanh %8 : vector<2x32xf32>
    %10 = vector.extract_strided_slice %7 {offsets = [2, 0], sizes = [2, 32], strides = [1, 1]} : vector<16x32xf32> to vector<2x32xf32>
    %cst_9 = arith.constant dense<0.000000e+00> : vector<2x32xf32>
    %11 = tpu.matmul %9, %1, %cst_9 {dimension_numbers = #tpu.dot_dimension_numbers<[1], [0], [0], [1], [0, 0, 1, 1], [], []>} : vector<2x32xf32>, vector<32x32xf32>, vector<2x32xf32> -> vector<2x32xf32>
    %12 = arith.addf %10, %11 : vector<2x32xf32>
    %13 = math.tanh %12 : vector<2x32xf32>
    %14 = vector.extract_strided_slice %7 {offsets = [4, 0], sizes = [2, 32], strides = [1, 1]} : vector<16x32xf32> to vector<2x32xf32>
    %cst_10 = arith.constant dense<0.000000e+00> : vector<2x32xf32>
    %15 = tpu.matmul %13, %1, %cst_10 {dimension_numbers = #tpu.dot_dimension_numbers<[1], [0], [0], [1], [0, 0, 1, 1], [], []>} : vector<2x32xf32>, vector<32x32xf32>, vector<2x32xf32> -> vector<2x32xf32>
    %16 = arith.addf %14, %15 : vector<2x32xf32>
    %17 = math.tanh %16 : vector<2x32xf32>
    %18 = vector.extract_strided_slice %7 {offsets = [6, 0], sizes = [2, 32], strides = [1, 1]} : vector<16x32xf32> to vector<2x32xf32>
    %cst_11 = arith.constant dense<0.000000e+00> : vector<2x32xf32>
    %19 = tpu.matmul %17, %1, %cst_11 {dimension_numbers = #tpu.dot_dimension_numbers<[1], [0], [0], [1], [0, 0, 1, 1], [], []>} : vector<2x32xf32>, vector<32x32xf32>, vector<2x32xf32> -> vector<2x32xf32>
    %20 = arith.addf %18, %19 : vector<2x32xf32>
    %21 = math.tanh %20 : vector<2x32xf32>
    %22 = vector.extract_strided_slice %7 {offsets = [8, 0], sizes = [2, 32], strides = [1, 1]} : vector<16x32xf32> to vector<2x32xf32>
    %cst_12 = arith.constant dense<0.000000e+00> : vector<2x32xf32>
    %23 = tpu.matmul %21, %1, %cst_12 {dimension_numbers = #tpu.dot_dimension_numbers<[1], [0], [0], [1], [0, 0, 1, 1], [], []>} : vector<2x32xf32>, vector<32x32xf32>, vector<2x32xf32> -> vector<2x32xf32>
    %24 = arith.addf %22, %23 : vector<2x32xf32>
    %25 = math.tanh %24 : vector<2x32xf32>
    %26 = vector.extract_strided_slice %7 {offsets = [10, 0], sizes = [2, 32], strides = [1, 1]} : vector<16x32xf32> to vector<2x32xf32>
    %cst_13 = arith.constant dense<0.000000e+00> : vector<2x32xf32>
    %27 = tpu.matmul %25, %1, %cst_13 {dimension_numbers = #tpu.dot_dimension_numbers<[1], [0], [0], [1], [0, 0, 1, 1], [], []>} : vector<2x32xf32>, vector<32x32xf32>, vector<2x32xf32> -> vector<2x32xf32>
    %28 = arith.addf %26, %27 : vector<2x32xf32>
    %29 = math.tanh %28 : vector<2x32xf32>
    %30 = vector.extract_strided_slice %7 {offsets = [12, 0], sizes = [2, 32], strides = [1, 1]} : vector<16x32xf32> to vector<2x32xf32>
    %cst_14 = arith.constant dense<0.000000e+00> : vector<2x32xf32>
    %31 = tpu.matmul %29, %1, %cst_14 {dimension_numbers = #tpu.dot_dimension_numbers<[1], [0], [0], [1], [0, 0, 1, 1], [], []>} : vector<2x32xf32>, vector<32x32xf32>, vector<2x32xf32> -> vector<2x32xf32>
    %32 = arith.addf %30, %31 : vector<2x32xf32>
    %33 = math.tanh %32 : vector<2x32xf32>
    %34 = vector.extract_strided_slice %7 {offsets = [14, 0], sizes = [2, 32], strides = [1, 1]} : vector<16x32xf32> to vector<2x32xf32>
    %cst_15 = arith.constant dense<0.000000e+00> : vector<2x32xf32>
    %35 = tpu.matmul %33, %1, %cst_15 {dimension_numbers = #tpu.dot_dimension_numbers<[1], [0], [0], [1], [0, 0, 1, 1], [], []>} : vector<2x32xf32>, vector<32x32xf32>, vector<2x32xf32> -> vector<2x32xf32>
    %36 = arith.addf %34, %35 : vector<2x32xf32>
    %37 = math.tanh %36 : vector<2x32xf32>
    %38 = tpu.concatenate %9, %13, %17, %21, %25, %29, %33, %37 in 0 : vector<2x32xf32>, vector<2x32xf32>, vector<2x32xf32>, vector<2x32xf32>, vector<2x32xf32>, vector<2x32xf32>, vector<2x32xf32>, vector<2x32xf32> -> vector<16x32xf32>
    %cst_16 = arith.constant dense<0.000000e+00> : vector<16x16xf32>
    %39 = tpu.matmul %38, %2, %cst_16 {dimension_numbers = #tpu.dot_dimension_numbers<[1], [0], [0], [1], [0, 0, 1, 1], [], []>} : vector<16x32xf32>, vector<32x16xf32>, vector<16x16xf32> -> vector<16x16xf32>
    %c0_17 = arith.constant 0 : index
    %c0_18 = arith.constant 0 : index
    %40 = vector.load %arg6[%c0_17, %c0_18] : memref<1x16xf32, #tpu.memory_space<vmem>>, vector<1x16xf32>
    %41 = vector.broadcast %40 : vector<1x16xf32> to vector<16x16xf32>
    %42 = arith.addf %39, %41 : vector<16x16xf32>
    %c0_19 = arith.constant 0 : index
    %c0_20 = arith.constant 0 : index
    %43 = vector.load %arg7[%c0_19, %c0_20] : memref<16x16xf32, #tpu.memory_space<vmem>>, vector<16x16xf32>
    tpu.vector_store %arg7[%c0_19, %c0_20], %42 {strides = array<i32>} : memref<16x16xf32, #tpu.memory_space<vmem>>, vector<16x16xf32>,
    return
  }
  func.func @transform_0(%arg0: i32) -> (i32, i32) {
    %c0_i32 = arith.constant 0 : i32
    %c0_i32_0 = arith.constant 0 : i32
    return %arg0, %c0_i32 : i32, i32
  }
  func.func @transform_1(%arg0: i32) -> (i32, i32) {
    %c0_i32 = arith.constant 0 : i32
    %c0_i32_0 = arith.constant 0 : i32
    %c0_i32_1 = arith.constant 0 : i32
    return %c0_i32, %c0_i32_0 : i32, i32
  }
  func.func @transform_2(%arg0: i32) -> (i32, i32) {
    %c0_i32 = arith.constant 0 : i32
    %c0_i32_0 = arith.constant 0 : i32
    %c0_i32_1 = arith.constant 0 : i32
    return %c0_i32, %c0_i32_0 : i32, i32
  }
  func.func @transform_3(%arg0: i32) -> (i32, i32) {
    %c0_i32 = arith.constant 0 : i32
    %c0_i32_0 = arith.constant 0 : i32
    %c0_i32_1 = arith.constant 0 : i32
    return %c0_i32, %c0_i32_0 : i32, i32
  }
  func.func @transform_4(%arg0: i32) -> (i32, i32) {
    %c0_i32 = arith.constant 0 : i32
    %c0_i32_0 = arith.constant 0 : i32
    %c0_i32_1 = arith.constant 0 : i32
    return %c0_i32, %c0_i32_0 : i32, i32
  }
  func.func @transform_5(%arg0: i32) -> (i32, i32) {
    %c0_i32 = arith.constant 0 : i32
    %c0_i32_0 = arith.constant 0 : i32
    %c0_i32_1 = arith.constant 0 : i32
    return %c0_i32, %c0_i32_0 : i32, i32
  }
  func.func @transform_6(%arg0: i32) -> (i32, i32) {
    %c0_i32 = arith.constant 0 : i32
    %c0_i32_0 = arith.constant 0 : i32
    return %arg0, %c0_i32 : i32, i32
  }
}

</mosaic_0001>

<bundles_post_ra>
// kernel: _forward_impl.1
= control target key start
LH: loop header
LB: loop body
LE: loop exit
PB: predicated region body
PF: predicated region fallthrough
CT: control target
= control target key end

     0   :  { %vm42_vm0 = vcmask 130048   ;;  %v1003_v5 = vmov 0.0|0.0   ;;  %vm1004_vm1 = vmmov 0   ;;  %v1005_v9 = vmov 0.0   ;;  %s1160_s1 = inlined_call_operand.vmem [shape: f32[16,32], index: 1, kind: input, shape index: {}]   ;;  %s1161_s0 = inlined_call_operand.vmem [shape: f32[16,16], index: 0, kind: input, shape index: {}]   ;;  %s1162_s2 = inlined_call_operand.vmem [shape: f32[32,32], index: 2, kind: input, shape index: {}]   ;;  %s1163_s3 = inlined_call_operand.vmem [shape: f32[1,32], index: 3, kind: input, shape index: {}]   ;;  %s1164_s4 = inlined_call_operand.vmem [shape: f32[32,16], index: 4, kind: input, shape index: {}]   ;;  %s1165_s5 = inlined_call_operand.vmem [shape: f32[1,16], index: 5, kind: input, shape index: {}]   ;;  %s1166_s6 = inlined_call_operand.vmem [shape: f32[16,16], index: 6, kind: output, shape index: {}]  }
   0x1   :  { %v23_v0 = vld [vmem:[%s1160_s1] sm:$0xff]  ;;  %v24_v1 = vld [vmem:[%s1160_s1 + $0x8] sm:$0xff]  ;;  %934 = vmatprep.subr.bf16.mxu1 %v1003_v5  ;;  %v27_v8 = vld [vmem:[%s1162_s2 + $0x10] sm:$0xff]  ;;  %850 = vmatprep.mubr.msk.f32.mxu1 %vm1004_vm1, %v1005_v9  ;;  %vm125_vm2 = vcmask 261120   ;;  %vm674_vm3 = vcmask 1041408   ;;  %vm676_vm4 = vcmask 1043456  }
   0x2   :  { %v33_v2 = vld [vmem:[%s1161_s0] sm:$0xff]  ;;  %v930_v3 = vpack.c.bf16 %v24_v1, %v23_v0  ;;  %v34_v4 = vld [vmem:[%s1161_s0 + $0x8] sm:$0xff]  ;;  %v28_v11 = vld [vmem:[%s1162_s2 + $0x18] sm:$0xff]  ;;  %vm678_vm5 = vcmask 1045504  }
   0x3   :  { %839 = vmatprep.mubr.msk.f32.mxu0 %vm42_vm0, %v33_v2  ;;  %v25_v6 = vld [vmem:[%s1162_s2] sm:$0xff]  ;;  %v26_v7 = vld [vmem:[%s1162_s2 + $0x8] sm:$0xff]  ;;  %v1076_v12 = vpack.c.bf16 %v28_v11, %v27_v8  ;;  %v31_v60 = vld [vmem:[%s1164_s4 + $0x10] sm:$0xff] }
   0x4   :  { %931 = vmatprep.subr.bf16.mxu0 %v930_v3  ;;  %v1067_v10 = vpack.c.bf16 %v26_v7, %v25_v6  ;;  %v777_v13 = vld [vmem:[%s1163_s3] ss:$0 sm:$0xff]  ;;  %v30_v59 = vld [vmem:[%s1164_s4 + $0x8] sm:$0xff]  ;;  %v32_v62 = vld [vmem:[%s1164_s4 + $0x18] sm:$0xff] }
   0x5   :  { %933 = vmatpush3.bf16.msra.mxu0 %v930_v3  ;;  %v29_v58 = vld [vmem:[%s1164_s4] sm:$0xff]  ;;  %v980_v63 = vpack.c.bf16 %v32_v62, %v31_v60 }
   0x6   :  { %940 = vmatprep.subr.bf16.mxu0 %v1003_v5  ;;  %936 = vmatpush3.bf16.msra.mxu1 %v1067_v10  ;;  %v976_v61 = vpack.c.bf16 %v30_v59, %v29_v58  ;;  %v787_v6 = vld [vmem:[%s1165_s5] ss:$0 sm:$0xff] }
   0x7   :  { %937 = vmatprep.subr.bf16.mxu1 %v1003_v5 }
   0x8   :  { %840 = vmatmul.mubr.msk.f32.vlgmr.msra.gmra.mrb[0].mxu0 %vm42_vm0, %v34_v4 }
   0x9   :  { %861 = vmatprep.mubr.msk.f32.mxu0 %vm1004_vm1, %v1005_v9  ;;  %942 = vmatpush3.bf16.msra.mxu0 %v1067_v10 }
   0xa   :  { %943 = vmatprep.subr.bf16.mxu0 %v1003_v5  ;;  %939 = vmatpush3.bf16.msra.mxu1 %v1076_v12 }
   0xb   :  { %946 = vmatprep.subr.bf16.mxu1 %v1003_v5 }
   0xd   :  { %945 = vmatpush3.bf16.msra.mxu0 %v1076_v12 }
   0xe   :  { %952 = vmatprep.subr.bf16.mxu0 %v1003_v5 }
  0xdb   :  { %v841_v14 = vpop.f32.mrb[0].mxu0 }
  0xdc   :  { %v1088_v15 = vadd.f32 %v841_v14, %v777_v13  ;;  %v115_v16 = vpop.f32.mrb[1].mxu0 }
  0xdd   :  { %v116_v17 = vadd.f32 %v777_v13, %v115_v16 }
  0xdf   :  { %987 = vtanh.f32 %v116_v17 }
  0xe9   :  { %v988_v18 = vpop.eup %987 }
  0xea   :  { %851 = vmatmul.mubr.msk.f32.vlgmr.msra.gmra.mrb[0].mxu1 %vm125_vm2, %v988_v18 }
  0xeb   :  { %948 = vmatpush3.bf16.msra.mxu1 %v1067_v10  ;;  %872 = vmatprep.mubr.msk.f32.mxu1 %vm1004_vm1, %v1005_v9 }
  0xec   :  { %949 = vmatprep.subr.bf16.mxu1 %v1003_v5 }
  0xef   :  { %951 = vmatpush3.bf16.msra.mxu1 %v1076_v12 }
  0xf0   :  { %958 = vmatprep.subr.bf16.mxu1 %v1003_v5 }
 0x1bd   :  { %v195_v19 = vpop.f32.mrb[0].mxu1 }
 0x1be   :  { %v200_v20 = vrot.slane %v195_v19, 6  ;;  %v852_v21 = vpop.f32.mrb[1].mxu1 }
 0x1c0   :  { %v202_v22 = vadd.f32 %v200_v20, %v116_v17 }
 0x1c2   :  { %989 = vtanh.f32 %v202_v22 }
 0x1cc   :  { %v990_v23 = vpop.eup %989 }
 0x1cd   :  { %v205_v24 = vrot.slane %v990_v23, 2  ;;  %v675_v30 = vsel %vm674_vm3, %v988_v18, %v990_v23 }
 0x1cf   :  { %862 = vmatmul.mubr.msk.f32.vlgmr.msra.gmra.mrb[2].mxu0 %vm125_vm2, %v205_v24 }
 0x1d0   :  { %954 = vmatpush3.bf16.msra.mxu0 %v1067_v10  ;;  %883 = vmatprep.mubr.msk.f32.mxu0 %vm1004_vm1, %v1005_v9 }
 0x1d1   :  { %955 = vmatprep.subr.bf16.mxu0 %v1003_v5 }
 0x1d4   :  { %957 = vmatpush3.bf16.msra.mxu0 %v1076_v12 }
 0x1d5   :  { %964 = vmatprep.subr.bf16.mxu0 %v1003_v5 }
 0x2a2   :  { %v274_v25 = vpop.f32.mrb[2].mxu0 }
 0x2a3   :  { %v279_v26 = vrot.slane %v274_v25, 4  ;;  %v863_v27 = vpop.f32.mrb[3].mxu0 }
 0x2a5   :  { %v281_v28 = vadd.f32 %v279_v26, %v116_v17 }
 0x2a7   :  { %991 = vtanh.f32 %v281_v28 }
 0x2b1   :  { %v992_v29 = vpop.eup %991 }
 0x2b2   :  { %v284_v31 = vrot.slane %v992_v29, 4  ;;  %v677_v32 = vsel %vm676_vm4, %v675_v30, %v992_v29 }
 0x2b4   :  { %873 = vmatmul.mubr.msk.f32.vlgmr.msra.gmra.mrb[2].mxu1 %vm125_vm2, %v284_v31 }
 0x2b5   :  { %960 = vmatpush3.bf16.msra.mxu1 %v1067_v10  ;;  %894 = vmatprep.mubr.msk.f32.mxu1 %vm1004_vm1, %v1005_v9 }
 0x2b6   :  { %961 = vmatprep.subr.bf16.mxu1 %v1003_v5 }
 0x2b9   :  { %963 = vmatpush3.bf16.msra.mxu1 %v1076_v12 }
 0x2ba   :  { %970 = vmatprep.subr.bf16.mxu1 %v1003_v5 }
 0x387   :  { %v353_v33 = vpop.f32.mrb[2].mxu1 }
 0x388   :  { %v358_v34 = vrot.slane %v353_v33, 2  ;;  %v874_v35 = vpop.f32.mrb[3].mxu1 }
 0x38a   :  { %v360_v36 = vadd.f32 %v358_v34, %v116_v17 }
 0x38c   :  { %993 = vtanh.f32 %v360_v36 }
 0x396   :  { %v994_v37 = vpop.eup %993 }
 0x397   :  { %v363_v38 = vrot.slane %v994_v37, 6  ;;  %v679_v39 = vsel %vm678_vm5, %v677_v32, %v994_v37 }
 0x399   :  { %884 = vmatmul.mubr.msk.f32.vlgmr.msra.gmra.mrb[4].mxu0 %vm125_vm2, %v363_v38 }
 0x39a   :  { %966 = vmatpush3.bf16.msra.mxu0 %v1067_v10  ;;  %905 = vmatprep.mubr.msk.f32.mxu0 %vm1004_vm1, %v1005_v9 }
 0x39b   :  { %967 = vmatprep.subr.bf16.mxu0 %v1003_v5 }
 0x39e   :  { %969 = vmatpush3.bf16.msra.mxu0 %v1076_v12 }
 0x39f   :  { %977 = vmatprep.subr.bf16.mxu0 %v976_v61 }
 0x46c   :  { %v432_v40 = vpop.f32.mrb[4].mxu0 }
 0x46d   :  { %v436_v41 = vadd.f32 %v432_v40, %v1088_v15  ;;  %v885_v42 = vpop.f32.mrb[5].mxu0 }
 0x46f   :  { %995 = vtanh.f32 %v436_v41 }
 0x479   :  { %v996_v43 = vpop.eup %995 }
 0x47a   :  { %895 = vmatmul.mubr.msk.f32.vlgmr.msra.gmra.mrb[4].mxu1 %vm125_vm2, %v996_v43 }
 0x47b   :  { %972 = vmatpush3.bf16.msra.mxu1 %v1067_v10  ;;  %916 = vmatprep.mubr.msk.f32.mxu1 %vm1004_vm1, %v1005_v9 }
 0x47c   :  { %973 = vmatprep.subr.bf16.mxu1 %v1003_v5 }
 0x47f   :  { %975 = vmatpush3.bf16.msra.mxu1 %v1076_v12 }
 0x54d   :  { %v507_v44 = vpop.f32.mrb[4].mxu1 }
 0x54e   :  { %v512_v45 = vrot.slane %v507_v44, 6  ;;  %v896_v46 = vpop.f32.mrb[5].mxu1 }
 0x550   :  { %v514_v47 = vadd.f32 %v512_v45, %v1088_v15 }
 0x552   :  { %997 = vtanh.f32 %v514_v47 }
 0x55c   :  { %v998_v48 = vpop.eup %997 }
 0x55d   :  { %v517_v49 = vrot.slane %v998_v48, 2  ;;  %v680_v55 = vsel %vm674_vm3, %v996_v43, %v998_v48 }
 0x55f   :  { %906 = vmatmul.mubr.msk.f32.vlgmr.msra.gmra.mrb[6].mxu0 %vm125_vm2, %v517_v49 }
 0x560   :  { %927 = vmatprep.mubr.msk.f32.mxu0 %vm125_vm2, %v679_v39  ;;  %979 = vmatpush3.bf16.msra.mxu0 %v976_v61 }
 0x561   :  { %981 = vmatprep.subr.bf16.mxu0 %v980_v63 }
 0x564   :  { %983 = vmatpush3.bf16.msra.mxu0 %v980_v63 }
 0x632   :  { %v586_v50 = vpop.f32.mrb[6].mxu0 }
 0x633   :  { %v591_v51 = vrot.slane %v586_v50, 4  ;;  %v907_v52 = vpop.f32.mrb[7].mxu0 }
 0x635   :  { %v593_v53 = vadd.f32 %v591_v51, %v1088_v15 }
 0x637   :  { %999 = vtanh.f32 %v593_v53 }
 0x641   :  { %v1000_v54 = vpop.eup %999 }
 0x642   :  { %v596_v56 = vrot.slane %v1000_v54, 4  ;;  %v681_v57 = vsel %vm676_vm4, %v680_v55, %v1000_v54 }
 0x644   :  { %917 = vmatmul.mubr.msk.f32.vlgmr.msra.gmra.mrb[6].mxu1 %vm125_vm2, %v596_v56 }
 0x717   :  { %v665_v0 = vpop.f32.mrb[6].mxu1 }
 0x718   :  { %v670_v1 = vrot.slane %v665_v0, 2  ;;  %v918_v2 = vpop.f32.mrb[7].mxu1 }
 0x71a   :  { %v672_v3 = vadd.f32 %v670_v1, %v1088_v15 }
 0x71c   :  { %1001 = vtanh.f32 %v672_v3 }
 0x726   :  { %v1002_v4 = vpop.eup %1001 }
 0x727   :  { %v682_v5 = vsel %vm678_vm5, %v681_v57, %v1002_v4 }
 0x728   :  { %928 = vmatmul.mubr.msk.f32.vlgmr.msra.gmra.mrb[8].mxu0 %vm125_vm2, %v682_v5 }
 0x7fb   :  { %v929_v7 = vpop.f32.mrb[8].mxu0 }
 0x7fc   :  { %v768_v8 = vadd.f32 %v929_v7, %v787_v6  ;;  %v762_v9 = vpop.f32.mrb[9].mxu0 }
 0x7fd   :  { %v763_v10 = vadd.f32 %v787_v6, %v762_v9 }
 0x7fe   :  { %772 = vst.msk [vmem:[%s1166_s6 + $0x8] sm:$0xff] %vm42_vm0, %v768_v8 }
 0x7ff   :  { %771 = vst.msk [vmem:[%s1166_s6] sm:$0xff] %vm42_vm0, %v763_v10 }

</bundles_post_ra>
